<compile_context>
chip_gen: v6e
topology: v6e:2x2x1
jax: 0.10.0
libtpu: 0.0.40
codegen_flags: <defaults>
</compile_context>

<pallas_src>
import functools

import jax
import jax.numpy as jnp
from jax.experimental import pallas as pl
from jax.experimental.pallas import tpu as pltpu


# --------------------------------------------------------------------------
# Kernels
# --------------------------------------------------------------------------
def _fused_kernel(x_ref, w1t_ref, w2t_ref, o_ref, *, hw):
    """Single-pass: pool + shared MLP + sigmoid + scale for one (Bt, C, HW) block."""
    bt = x_ref.shape[0]

    x = x_ref[...]                                                   # native dtype
    max_p = jnp.max(x, axis=2).astype(jnp.float32)                   # (Bt, C)
    avg_p = jnp.sum(x, axis=2, dtype=jnp.float32) * jnp.float32(1.0 / hw)
    del x  # do not keep the full tile live across the MLP (re-read from VMEM below)

    # Shared MLP, max/avg paths fused into one matmul pair; weights stay in
    # their native dtype (bf16 MXU path), pooled vectors are tiny casts.
    p = jnp.concatenate([max_p, avg_p], axis=0).astype(w1t_ref.dtype)  # (2Bt, C)
    h = jnp.maximum(jnp.dot(p, w1t_ref[...],
                            preferred_element_type=jnp.float32), 0.0)  # (2Bt, hidden)
    fc = jnp.dot(h.astype(w2t_ref.dtype), w2t_ref[...],
                 preferred_element_type=jnp.float32)                   # (2Bt, C)
    attn = jax.nn.sigmoid(fc[:bt] + fc[bt:])                           # (Bt, C) f32

    # Streaming load -> mul -> store; attention kept in f32 (matches reference).
    o_ref[...] = (x_ref[...] * attn[:, :, None]).astype(o_ref.dtype)


def _pool_mlp_kernel(x_ref, w1t_ref, w2t_ref, attn_ref, max_sc, sum_sc, *,
                     hw, hw_tile):
    """Split path, pass 1: running max/sum over HW tiles, MLP on the last tile."""
    s = pl.program_id(1)

    @pl.when(s == 0)
    def _():
        max_sc[...] = jnp.full(max_sc.shape, -jnp.inf, max_sc.dtype)
        sum_sc[...] = jnp.zeros(sum_sc.shape, sum_sc.dtype)

    x = x_ref[...]                                                   # (1, C, hw_tile)
    if hw % hw_tile != 0:
        # Only the last spatial block has out-of-range lanes; mask them.
        lane = jax.lax.broadcasted_iota(jnp.int32, (1, 1, hw_tile), 2)
        valid = (s * hw_tile + lane) < hw
        x_max = jnp.where(valid, x, jnp.asarray(-jnp.inf, x.dtype))
        x_sum = jnp.where(valid, x, jnp.asarray(0, x.dtype))
    else:
        x_max = x
        x_sum = x

    max_sc[...] = jnp.maximum(max_sc[...], jnp.max(x_max, axis=2).astype(jnp.float32))
    sum_sc[...] = sum_sc[...] + jnp.sum(x_sum, axis=2, dtype=jnp.float32)

    @pl.when(s == pl.num_programs(1) - 1)
    def _():
        bt = max_sc.shape[0]
        max_p = max_sc[...]
        avg_p = sum_sc[...] * jnp.float32(1.0 / hw)
        p = jnp.concatenate([max_p, avg_p], axis=0).astype(w1t_ref.dtype)
        h = jnp.maximum(jnp.dot(p, w1t_ref[...],
                                preferred_element_type=jnp.float32), 0.0)
        fc = jnp.dot(h.astype(w2t_ref.dtype), w2t_ref[...],
                     preferred_element_type=jnp.float32)
        attn = jax.nn.sigmoid(fc[:bt] + fc[bt:])                     # (1, C) f32
        attn_ref[...] = attn[:, :, None]                             # (1, C, 1)


def _scale_kernel(x_ref, attn_ref, o_ref):
    """Split path, pass 2: per-channel scale (pure streaming elementwise)."""
    o_ref[...] = (x_ref[...] * attn_ref[...]).astype(o_ref.dtype)


# --------------------------------------------------------------------------
# Tiling / budget helpers
# --------------------------------------------------------------------------
def _vmem_capacity_bytes():
    try:
        return int(pltpu.get_tpu_info().vmem_capacity_bytes)
    except Exception:
        return 64 * 1024 * 1024   # conservative: assume v7x-sized VMEM


def _choose_batch_tile(B, per_batch_bytes, target_bytes, *, min_steps=8,
                       min_block_bytes=512 * 1024):
    """Largest divisor of B whose block fits the target, while keeping enough
    grid steps for pipelining + megacore (>=4 steps/core on v7x) and blocks
    above ~512 KiB (DMA-efficiency knee)."""
    divisors = [d for d in range(1, B + 1) if B % d == 0]
    fits = [d for d in divisors if d * per_batch_bytes <= target_bytes]
    if not fits:
        return 1
    good = [d for d in fits
            if B // d >= min(min_steps, B)
            and (d * per_batch_bytes >= min_block_bytes or d == 1)]
    return max(good) if good else max(fits)


def _vmem_budget(block_bytes, w_bytes, cap_bytes):
    # double-buffered in + out blocks + ~1 block of in-kernel temporaries
    # + weights + margin, capped below the physical VMEM of the smallest part.
    want = 5 * block_bytes + 2 * w_bytes + (1 << 20)
    return int(min(cap_bytes, max(16 * 1024 * 1024, want)))


# --------------------------------------------------------------------------
# Wrapper
# --------------------------------------------------------------------------
def channel_attention_pallas(x, w1, w2, *, block_bytes_target=None,
                             split_threshold_bytes=4 * 1024 * 1024,
                             min_grid_steps=8):
    """x: (B, C, H, W); w1: (hidden, C) = fc1 weight; w2: (C, hidden) = fc2 weight."""
    B, C, H, W = x.shape
    HW = H * W
    hidden = w1.shape[0]
    if not jnp.issubdtype(x.dtype, jnp.floating):
        raise TypeError("channel_attention_pallas expects a floating-point input")

    dsize = jnp.dtype(x.dtype).itemsize
    w_dsize = jnp.dtype(w1.dtype).itemsize
    w_bytes = 2 * C * hidden * w_dsize

    vmem_phys = _vmem_capacity_bytes()
    small_vmem = vmem_phys <= 64 * 1024 * 1024          # v7x-class part
    if block_bytes_target is None:
        block_bytes_target = (2 if small_vmem else 4) * 1024 * 1024
    vmem_cap = (40 if small_vmem else 64) * 1024 * 1024

    # Metadata-only reshape; no pad, no extra HBM sweeps.
    x3 = x.reshape(B, C, HW)
    w1t = jnp.transpose(w1)   # (C, hidden)
    w2t = jnp.transpose(w2)   # (hidden, C)

    per_batch_bytes = C * HW * dsize

    if per_batch_bytes <= split_threshold_bytes:
        out3 = _run_fused(x3, w1t, w2t, HW, block_bytes_target, vmem_cap,
                          w_bytes, min_grid_steps)
    else:
        out3 = _run_split(x3, w1t, w2t, HW, block_bytes_target, vmem_cap, w_bytes)

    return out3.reshape(B, C, H, W)


def _run_fused(x3, w1t, w2t, hw, block_bytes_target, vmem_cap, w_bytes, min_steps):
    B, C, HW = x3.shape
    hidden = w1t.shape[1]
    dsize = jnp.dtype(x3.dtype).itemsize
    per_batch_bytes = C * HW * dsize

    Bt = _choose_batch_tile(B, per_batch_bytes, block_bytes_target,
                            min_steps=min_steps)
    block_bytes = Bt * per_batch_bytes
    vmem_bytes = _vmem_budget(block_bytes, w_bytes, vmem_cap)
    grid = (B // Bt,)

    cost = pl.CostEstimate(
        flops=int(3 * B * C * HW + 16 * B * C * hidden),
        transcendentals=int(2 * B * C),
        bytes_accessed=int(2 * B * C * HW * dsize + w_bytes))

    return pl.pallas_call(
        functools.partial(_fused_kernel, hw=HW),
        out_shape=jax.ShapeDtypeStruct((B, C, HW), x3.dtype),
        grid_spec=pltpu.PrefetchScalarGridSpec(
            num_scalar_prefetch=0,
            grid=grid,
            in_specs=[
                pl.BlockSpec((Bt, C, HW), lambda b: (b, 0, 0)),
                pl.BlockSpec((C, hidden), lambda b: (0, 0)),   # resident weights
                pl.BlockSpec((hidden, C), lambda b: (0, 0)),   # resident weights
            ],
            out_specs=pl.BlockSpec((Bt, C, HW), lambda b: (b, 0, 0)),
        ),
        compiler_params=pltpu.CompilerParams(
            dimension_semantics=("parallel",),
            vmem_limit_bytes=vmem_bytes),
        cost_estimate=cost,
    )(x3, w1t, w2t)


def _run_split(x3, w1t, w2t, hw, block_bytes_target, vmem_cap, w_bytes):
    B, C, HW = x3.shape
    hidden = w1t.shape[1]
    dsize = jnp.dtype(x3.dtype).itemsize

    # Lane-aligned spatial tile close to the target block size (Bt = 1).
    hw_tile = (block_bytes_target // max(1, C * dsize)) // 128 * 128
    hw_tile = max(128, min(hw_tile, ((HW + 127) // 128) * 128))
    n_s = pl.cdiv(HW, hw_tile)
    block_bytes = C * hw_tile * dsize
    vmem_bytes = _vmem_budget(block_bytes, w_bytes, vmem_cap)

    pool_cost = pl.CostEstimate(
        flops=int(2 * B * C * HW + 16 * B * C * hidden),
        transcendentals=int(2 * B * C),
        bytes_accessed=int(B * C * HW * dsize + w_bytes + 4 * B * C))

    attn = pl.pallas_call(
        functools.partial(_pool_mlp_kernel, hw=HW, hw_tile=hw_tile),
        out_shape=jax.ShapeDtypeStruct((B, C, 1), jnp.float32),
        grid_spec=pltpu.PrefetchScalarGridSpec(
            num_scalar_prefetch=0,
            grid=(B, n_s),
            in_specs=[
                pl.BlockSpec((1, C, hw_tile), lambda b, s: (b, 0, s)),
                pl.BlockSpec((C, hidden), lambda b, s: (0, 0)),
                pl.BlockSpec((hidden, C), lambda b, s: (0, 0)),
            ],
            out_specs=pl.BlockSpec((1, C, 1), lambda b, s: (b, 0, 0)),
            scratch_shapes=[pltpu.VMEM((1, C), jnp.float32),
                            pltpu.VMEM((1, C), jnp.float32)],
        ),
        compiler_params=pltpu.CompilerParams(
            dimension_semantics=("parallel", "arbitrary"),
            vmem_limit_bytes=vmem_bytes),
        cost_estimate=pool_cost,
    )(x3, w1t, w2t)

    scale_cost = pl.CostEstimate(
        flops=int(B * C * HW),
        transcendentals=0,
        bytes_accessed=int(2 * B * C * HW * dsize + 4 * B * C))

    return pl.pallas_call(
        _scale_kernel,
        out_shape=jax.ShapeDtypeStruct((B, C, HW), x3.dtype),
        grid_spec=pltpu.PrefetchScalarGridSpec(
            num_scalar_prefetch=0,
            grid=(B, n_s),
            in_specs=[
                pl.BlockSpec((1, C, hw_tile), lambda b, s: (b, 0, s)),
                pl.BlockSpec((1, C, 1), lambda b, s: (b, 0, 0)),
            ],
            out_specs=pl.BlockSpec((1, C, hw_tile), lambda b, s: (b, 0, s)),
        ),
        compiler_params=pltpu.CompilerParams(
            dimension_semantics=("parallel", "parallel"),
            vmem_limit_bytes=vmem_bytes),
        cost_estimate=scale_cost,
    )(x3, attn)


# --------------------------------------------------------------------------
# Pure-JAX reference (matches the PyTorch forward)
# --------------------------------------------------------------------------
def channel_attention_ref(x, w1, w2):
    B, C, H, W = x.shape
    xf = x.reshape(B, C, H * W)
    max_p = jnp.max(xf, axis=-1)    # (B, C)
    avg_p = jnp.mean(xf, axis=-1)   # (B, C)

    def fc(p):
        h = jnp.maximum(p @ w1.T, 0.0)   # (B, hidden)
        return h @ w2.T                  # (B, C)

    attn = jax.nn.sigmoid(fc(max_p) + fc(avg_p))  # (B, C)
    return x * attn[:, :, None, None]


# --------------------------------------------------------------------------
# Self-test
# --------------------------------------------------------------------------
if __name__ == "__main__":
    ratio = 16
    key = jax.random.PRNGKey(0)

    def make_params(k, C, hidden, dtype):
        k1, k2 = jax.random.split(k)
        b1 = 1.0 / (C ** 0.5)
        b2 = 1.0 / (hidden ** 0.5)
        w1 = jax.random.uniform(k1, (hidden, C), jnp.float32, -b1, b1).astype(dtype)
        w2 = jax.random.uniform(k2, (C, hidden), jnp.float32, -b2, b2).astype(dtype)
        return w1, w2

    cases = [
        # (shape, dtype, kwargs, atol, rtol)
        ((2, 64, 16, 16), jnp.float32, {}, 1e-5, 1e-5),   # fused, lane-dense HW=256
        ((2, 64, 10, 10), jnp.float32, {}, 1e-5, 1e-5),   # fused, unaligned HW=100, no pad
        ((2, 64, 20, 20), jnp.float32,                    # force split path (HW-tiled reduce)
         dict(split_threshold_bytes=0, block_bytes_target=32 * 1024), 1e-5, 1e-5),
        ((2, 64, 16, 16), jnp.bfloat16, {}, 1e-1, 1e-1),  # bf16 MXU path
    ]

    for (shape, dtype, kwargs, atol, rtol) in cases:
        B, C, H, W = shape
        hidden = C // ratio
        key, kx, kp = jax.random.split(key, 3)
        x = jax.random.normal(kx, shape, jnp.float32).astype(dtype)
        w1, w2 = make_params(kp, C, hidden, dtype)

        out = jax.block_until_ready(channel_attention_pallas(x, w1, w2, **kwargs))
        ref = channel_attention_ref(x, w1, w2)
        assert out.shape == shape
        assert jnp.allclose(out.astype(jnp.float32), ref.astype(jnp.float32),
                            atol=atol, rtol=rtol), f"mismatch at {shape} {dtype}"

    print("KERNEL_OK")
</pallas_src>

<mosaic_0001>
module attributes {stable_mosaic.version = 11 : i64} {
  func.func @_fused_kernel(%arg0: i32, %arg1: memref<1x64x256xf32, #tpu.memory_space<vmem>>, %arg2: memref<64x4xf32, #tpu.memory_space<vmem>>, %arg3: memref<4x64xf32, #tpu.memory_space<vmem>>, %arg4: memref<1x64x256xf32, #tpu.memory_space<vmem>>) attributes {dimension_semantics = [#tpu.dimension_semantics<parallel>], iteration_bounds = array<i64: 2>, scalar_prefetch = 0 : i64, scratch_operands = 0 : i64, tpu.core_type = #tpu.core_type<tc>, window_params = [{transform_indices = @transform_0, window_bounds = array<i64: 1, 64, 256>}, {pipeline_mode = #tpu.pipeline_mode<synchronous>, transform_indices = @transform_1, window_bounds = array<i64: 64, 4>}, {pipeline_mode = #tpu.pipeline_mode<synchronous>, transform_indices = @transform_2, window_bounds = array<i64: 4, 64>}, {transform_indices = @transform_3, window_bounds = array<i64: 1, 64, 256>}]} {
    %c0 = arith.constant 0 : index
    %c0_0 = arith.constant 0 : index
    %c0_1 = arith.constant 0 : index
    %0 = vector.load %arg1[%c0, %c0_0, %c0_1] : memref<1x64x256xf32, #tpu.memory_space<vmem>>, vector<1x64x256xf32>
    %cst = arith.constant dense<0xFF800000> : vector<1x64xf32>
    %1 = vector.multi_reduction <maximumf>, %0, %cst [2] : vector<1x64x256xf32> to vector<1x64xf32>
    %cst_2 = arith.constant dense<0.000000e+00> : vector<1x64xf32>
    %2 = vector.multi_reduction <add>, %0, %cst_2 [2] : vector<1x64x256xf32> to vector<1x64xf32>
    %cst_3 = arith.constant 3.906250e-03 : f32
    %3 = vector.broadcast %cst_3 : f32 to vector<1x64xf32>
    %4 = arith.mulf %2, %3 : vector<1x64xf32>
    %5 = tpu.concatenate %1, %4 in 0 : vector<1x64xf32>, vector<1x64xf32> -> vector<2x64xf32>
    %c0_4 = arith.constant 0 : index
    %c0_5 = arith.constant 0 : index
    %6 = vector.load %arg2[%c0_4, %c0_5] : memref<64x4xf32, #tpu.memory_space<vmem>>, vector<64x4xf32>
    %cst_6 = arith.constant dense<0.000000e+00> : vector<2x4xf32>
    %7 = tpu.matmul %5, %6, %cst_6 {dimension_numbers = #tpu.dot_dimension_numbers<[1], [0], [0], [1], [0, 0, 1, 1], [], []>} : vector<2x64xf32>, vector<64x4xf32>, vector<2x4xf32> -> vector<2x4xf32>
    %cst_7 = arith.constant 0.000000e+00 : f32
    %8 = vector.broadcast %cst_7 : f32 to vector<2x4xf32>
    %9 = arith.maximumf %7, %8 : vector<2x4xf32>
    %c0_8 = arith.constant 0 : index
    %c0_9 = arith.constant 0 : index
    %10 = vector.load %arg3[%c0_8, %c0_9] : memref<4x64xf32, #tpu.memory_space<vmem>>, vector<4x64xf32>
    %cst_10 = arith.constant dense<0.000000e+00> : vector<2x64xf32>
    %11 = tpu.matmul %9, %10, %cst_10 {dimension_numbers = #tpu.dot_dimension_numbers<[1], [0], [0], [1], [0, 0, 1, 1], [], []>} : vector<2x4xf32>, vector<4x64xf32>, vector<2x64xf32> -> vector<2x64xf32>
    %12 = vector.extract_strided_slice %11 {offsets = [0, 0], sizes = [1, 64], strides = [1, 1]} : vector<2x64xf32> to vector<1x64xf32>
    %13 = vector.extract_strided_slice %11 {offsets = [1, 0], sizes = [1, 64], strides = [1, 1]} : vector<2x64xf32> to vector<1x64xf32>
    %14 = arith.addf %12, %13 : vector<1x64xf32>
    %15 = arith.negf %14 : vector<1x64xf32>
    %16 = math.exp %15 : vector<1x64xf32>
    %cst_11 = arith.constant 1.000000e+00 : f32
    %17 = vector.broadcast %cst_11 : f32 to vector<1x64xf32>
    %18 = arith.addf %17, %16 : vector<1x64xf32>
    %19 = arith.divf %17, %18 : vector<1x64xf32>
    %c0_12 = arith.constant 0 : index
    %c0_13 = arith.constant 0 : index
    %c0_14 = arith.constant 0 : index
    %20 = vector.load %arg1[%c0_12, %c0_13, %c0_14] : memref<1x64x256xf32, #tpu.memory_space<vmem>>, vector<1x64x256xf32>
    %21 = vector.shape_cast %19 : vector<1x64xf32> to vector<1x64x1xf32>
    %22 = vector.broadcast %21 : vector<1x64x1xf32> to vector<1x64x256xf32>
    %23 = arith.mulf %20, %22 : vector<1x64x256xf32>
    %c0_15 = arith.constant 0 : index
    %c0_16 = arith.constant 0 : index
    %c0_17 = arith.constant 0 : index
    %24 = vector.load %arg4[%c0_15, %c0_16, %c0_17] : memref<1x64x256xf32, #tpu.memory_space<vmem>>, vector<1x64x256xf32>
    tpu.vector_store %arg4[%c0_15, %c0_16, %c0_17], %23 {strides = array<i32>} : memref<1x64x256xf32, #tpu.memory_space<vmem>>, vector<1x64x256xf32>,
    return
  }
  func.func @transform_0(%arg0: i32) -> (i32, i32, i32) {
    %c0_i32 = arith.constant 0 : i32
    %c0_i32_0 = arith.constant 0 : i32
    %c0_i32_1 = arith.constant 0 : i32
    return %arg0, %c0_i32, %c0_i32_0 : i32, i32, i32
  }
  func.func @transform_1(%arg0: i32) -> (i32, i32) {
    %c0_i32 = arith.constant 0 : i32
    %c0_i32_0 = arith.constant 0 : i32
    %c0_i32_1 = arith.constant 0 : i32
    return %c0_i32, %c0_i32_0 : i32, i32
  }
  func.func @transform_2(%arg0: i32) -> (i32, i32) {
    %c0_i32 = arith.constant 0 : i32
    %c0_i32_0 = arith.constant 0 : i32
    %c0_i32_1 = arith.constant 0 : i32
    return %c0_i32, %c0_i32_0 : i32, i32
  }
  func.func @transform_3(%arg0: i32) -> (i32, i32, i32) {
    %c0_i32 = arith.constant 0 : i32
    %c0_i32_0 = arith.constant 0 : i32
    %c0_i32_1 = arith.constant 0 : i32
    return %arg0, %c0_i32, %c0_i32_0 : i32, i32, i32
  }
}

</mosaic_0001>

<bundles_post_ra>
// kernel: tpu_custom_call.1
= control target key start
LH: loop header
LB: loop body
LE: loop exit
PB: predicated region body
PF: predicated region fallthrough
CT: control target
= control target key end

     0   :  { %8 = vsyncpa [#allocation3], 0  ;;  %s1259_s0 = inlined_call_operand.hbm [shape: f32[2,64,256], index: 0, kind: input, shape index: {}]   ;;  %s1260_s1 = inlined_call_operand.vmem [shape: f32[64,4], index: 1, kind: input, shape index: {}]   ;;  %s1261_s2 = inlined_call_operand.vmem [shape: f32[4,64], index: 2, kind: input, shape index: {}]   ;;  %s1262_s3 = inlined_call_operand.hbm [shape: f32[2,64,256], index: 3, kind: output, shape index: {}]  }
   0x1   :  { %10 = vsyncpa [#allocation3 + $0x1], 0 }
   0x2   :  { %11 = vsyncpa [#allocation4], 0 }
   0x3   :  { %13 = vsyncpa [#allocation4 + $0x1], 0  ;;  %s934_s12 = smov 0   ;;  %s936_s13 = smov 0  }
   0x4   :  { %s938_s14 = smov 0   ;;  %s940_s15 = smov 0  }
   0x5 LB: > { %s955_s16 = sadd.s32 4294967295, %s904_s15   ;;  %s701_s17 = sadd.s32 4294967294, %s904_s15   ;;  %s904_s15 = sphi %s940_s15, %s1277_s15   ;;  %s900_s14 = sphi %s938_s14, %s1276_s14   ;;  %s896_s13 = sphi %s936_s13, %s1275_s13   ;;  %s892_s12 = sphi %s934_s12, %s1274_s12  }
   0x6   : > { %s959_s18 = sadd.s32 1, %s904_s15   ;;  %s26_s19 = sadd.s32 1, %s900_s14 }
   0x7   : > { %s23_s20 = ssub.s32 %s904_s15, %s959_s18  ;;  %p33_p0 = scmp.ne.s32.totalorder %s900_s14, %s896_s13 }
   0x8   : > { %p24_p1 = scmp.eq.s32.totalorder %s23_s20, 0  ;;  %p34_p2 = scmp.eq.s32.totalorder %s904_s15, 0 }
   0x9   : > { %p39_p3 = scmp.ne.s32.totalorder %s896_s13, %s892_s12  ;;  %p40_p4 = scmp.eq.s32.totalorder %s955_s16, 0 }
   0xa   : > { %s971_s21 = scalar_select %p24_p1, %s900_s14, %s26_s19  }
   0xb   : > { %p973_p5 = por %p34_p2, %p33_p0  ;;  %p977_p6 = por %p40_p4, %p39_p3 }
   0xc   : > { %p105_p7 = scmp.eq.s32.totalorder %s955_s16, 1  ;;  %p111_p8 = scmp.eq.s32.totalorder %s701_s17, 1 }
   0xd   : > { %s1266_s23 = scalar_select %p977_p6, 1, 0 }
   0xe   : > { %p768_p10 = scmp.lt.s32.totalorder %s904_s15, 2  ;;  %p984_p11 = por %p105_p7, %p33_p0 }
   0xf   : > { %p988_p12 = por %p111_p8, %p39_p3  ;;  %s137_s26 = sand.u32 1, %s900_s14  }
  0x10   : > { %s1267_s24 = scalar_select %p984_p11, 1, 0 }
  0x11   : > { %s1268_s25 = scalar_select %p988_p12, 1, 0 }
  0x12   : > { %s719_s27 = sshll.u32 %s904_s15, 11  ;;  %s704_s28 = sshll.u32 %s137_s26, 7 }
  0x13   : > { %s997_s4 = scalar_lea.hbm %s1259_s0, %s719_s27  ;;  %s141_s5 = scalar_lea.vmem [#allocation2], %s704_s28 }
  0x14   : > { %s148_s6 = sshll.u32 %s141_s5, 4  ;;  %p1001_p13 = pnand %p768_p10, %p973_p5  ;;  %s1005_s6 = int_to_ptr.vmem [resolvable:$true] %s148_s6 }
  0x15   : > { %s1007_s8 = scalar_lea.sflag [#allocation3], %s137_s26  ;;  %s812_s9 = scalar_lea.hbm %s997_s4, 2048 }
  0x16   : > { %p813_p0 = scmp.ne.s32.totalorder %s997_s4, %s812_s9  ;;  %p814_p1 = pneg %p1001_p13 }
  0x17   : > { %s817_s17 = scalar_lea.hbm %s1259_s0, 4096  ;;  %p818_p4 = scmp.lt.s32.totalorder %s997_s4, %s1259_s0 }
  0x18   : > { %p815_p2 = pnand %p814_p1, %p813_p0  ;;  %p819_p5 = scmp.lt.s32.totalorder %s817_s17, %s812_s9 }
  0x1a   : > { %p816_p3 = pneg %p815_p2  ;;  %p820_p7 = por %p819_p5, %p818_p4 }
  0x1c   : > { %p821_p8 = pnand %p820_p7, %p816_p3 }
  0x1e   : > { %824 = shalt.err (!%p821_p8)
}
  0x1f   : > { %s825_s22 = scalar_lea.vmem %s1005_s6, 2048  ;;  %s906_s26 = smov [#allocation2]  }
  0x20   : > { %p826_p10 = scmp.ne.s32.totalorder %s1005_s6, %s825_s22  ;;  %s830_s27 = sshll.u32 %s906_s26, 4  ;;  %s831_s27 = int_to_ptr.vmem [resolvable:$false] %s830_s27 }
  0x21   : > { %s832_s28 = scalar_lea.vmem %s831_s27, 4096  ;;  %p833_p2 = scmp.lt.s32.totalorder %s1005_s6, %s831_s27 }
  0x22   : > { %p828_p9 = pnand %p826_p10, %p814_p1  ;;  %p834_p12 = scmp.lt.s32.totalorder %s832_s28, %s825_s22 }
  0x24   : > { %p829_p0 = pneg %p828_p9  ;;  %p835_p11 = por %p834_p12, %p833_p2 }
  0x26   : > { %p836_p6 = pnand %p835_p11, %p829_p0 }
  0x28   : > { %839 = shalt.err (!%p836_p6)
}
  0x29   : > { %s907_s29 = smov 256   ;;  %s908_s30 = smov 16  }
  0x2a   : > { %763 = dma.hbm_to_vmem [thread:$0]  (!%p1001_p13), %s997_s4, 2048, %s1005_s6, %s1007_s8, %s907_s29, %s907_s29, %s908_s30  }
  0x2b   : > { %p707_p9 = scmp.ge.s32.totalorder %s904_s15, 1  ;;  %p156_p1 = scmp.lt.s32.totalorder %s904_s15, 3 }
  0x2d   : > { %p157_p3 = pnand %p707_p9, %p156_p1 }
  0x2e   : > { %s1031_s5 = sand.u32 (!%p157_p3), 1, %s896_s13   ;;  %p1270_p6 = scmp.ne.s32.totalorder (!%p157_p3), %s1266_s23, 0 }
  0x2f   : > { %160 = sbr.rel (%p157_p3) target bundleno = 801 (0x321), region = 32  ;;  %s708_s9 = sshll.u32 (!%p157_p3), %s1031_s5, 7 }
  0x30   : > { %s163_s10 = scalar_lea.sflag (!%p157_p3), [#allocation3], %s1031_s5  ;;  %s1037_s11 = scalar_lea.vmem (!%p157_p3), [#allocation2], %s708_s9 }
  0x34   : > { %883 = dma.done.wait (%p1270_p6), %s163_s10, 2048  }
  0x35   : > { %885 = vsyncadd (%p1270_p6), %s163_s10, 4294965248  ;;  %v1044_v0 = vld [vmem:[%s1037_s11 + $0x20] sm:$0xff]  ;;  %v1047_v1 = vld [vmem:[%s1037_s11 + $0x28] sm:$0xff]  ;;  %v909_v32 = vmov 0.0   ;;  %vm910_vm0 = vmmov 0   ;;  %v269_v45 = vlaneseq  ;;  %vm280_vm1 = vcmask 130112  }
  0x36   : > { %v1050_v2 = vld [vmem:[%s1037_s11] sm:$0xff]  ;;  %v235_v3 = vadd.f32 %v1047_v1, %v1044_v0  ;;  %v1055_v4 = vld [vmem:[%s1037_s11 + $0x8] sm:$0xff]  ;;  %v1058_v5 = vld [vmem:[%s1037_s11 + $0x10] sm:$0xff]  ;;  %v211_v17 = vmax.f32 %v1044_v0, %v1047_v1  ;;  %732 = vmatprep.subr.mxu0 %v909_v32  ;;  %751 = vmatprep.subr.mxu1 %v909_v32  ;;  %vm287_vm2 = vcmask 195712   ;;  %vm294_vm3 = vcmask 261312   ;;  %s1179_s6 = scalar_lea.vmem [#allocation5], %s708_s9 }
  0x37   : > { %v1061_v6 = vld [vmem:[%s1037_s11 + $0x18] sm:$0xff]  ;;  %v229_v7 = vadd.f32 %v1055_v4, %v1050_v2  ;;  %v205_v8 = vmax.f32 %v1050_v2, %v1055_v4  ;;  %v1070_v10 = vld [vmem:[%s1037_s11 + $0x30] sm:$0xff]  ;;  %v1080_v14 = vld [vmem:[%s1037_s11 + $0x40] sm:$0xff]  ;;  %748 = vmatprep.mubr.msk.f32.mxu0 %vm910_vm0, %v909_v32  ;;  %753 = vmatprep.mubr.msk.f32.mxu1 %vm910_vm0, %v909_v32  ;;  %v270_v48 = vand.u32 127, %v269_v45  ;;  %v1147_v52 = vshrl.u32 %v269_v45, 7  ;;  %s720_s9 = sshll.u32 %s955_s16, 11 }
  0x38   : > { %236 = vadd.xlane.f32.xlu1 %v235_v3  ;;  %v232_v9 = vadd.f32 %v1061_v6, %v1058_v5  ;;  %v1073_v11 = vld [vmem:[%s1037_s11 + $0x38] sm:$0xff]  ;;  %v208_v13 = vmax.f32 %v1058_v5, %v1061_v6  ;;  %v1083_v15 = vld [vmem:[%s1037_s11 + $0x48] sm:$0xff]  ;;  %v1090_v18 = vld [vmem:[%s1037_s11 + $0x50] sm:$0xff]  ;;  %vm301_vm4 = vcmask 326912   ;;  %vm308_vm5 = vcmask 392512   ;;  %s628_s7 = sshll.u32 %s1179_s6, 4  ;;  %s1210_s19 = scalar_lea.hbm %s1262_s3, %s720_s9  ;;  %s1212_s7 = int_to_ptr.vmem [resolvable:$true] %s628_s7 }
  0x39   : > { %230 = vadd.xlane.f32.xlu0 %v229_v7  ;;  %v238_v12 = vadd.f32 %v1073_v11, %v1070_v10  ;;  %v241_v16 = vadd.f32 %v1083_v15, %v1080_v14  ;;  %v1093_v19 = vld [vmem:[%s1037_s11 + $0x58] sm:$0xff]  ;;  %v214_v21 = vmax.f32 %v1070_v10, %v1073_v11  ;;  %v1100_v22 = vld [vmem:[%s1037_s11 + $0x60] sm:$0xff]  ;;  %v1103_v23 = vld [vmem:[%s1037_s11 + $0x68] sm:$0xff]  ;;  %v217_v25 = vmax.f32 %v1080_v14, %v1083_v15  ;;  %s615_s16 = scalar_lea.sflag [#allocation4], %s1031_s5  ;;  %s840_s20 = scalar_lea.vmem %s1212_s7, 2048 }
  0x3a   : > { %v244_v20 = vadd.f32 %v1093_v19, %v1090_v18  ;;  %v247_v24 = vadd.f32 %v1103_v23, %v1100_v22  ;;  %v1110_v26 = vld [vmem:[%s1037_s11 + $0x70] sm:$0xff]  ;;  %v1113_v27 = vld [vmem:[%s1037_s11 + $0x78] sm:$0xff]  ;;  %v220_v29 = vmax.f32 %v1090_v18, %v1093_v19  ;;  %v223_v31 = vmax.f32 %v1100_v22, %v1103_v23  ;;  %v380_v35 = vld [vmem:[%s1260_s1 + $0x28] sm:$0xff]  ;;  %p841_p11 = scmp.ne.s32.totalorder %s1212_s7, %s840_s20  ;;  %p1271_p12 = scmp.ne.s32.totalorder %s1267_s24, 0 }
  0x3b   : > { %v250_v28 = vadd.f32 %v1113_v27, %v1110_v26  ;;  %v226_v30 = vmax.f32 %v1110_v26, %v1113_v27  ;;  %v382_v33 = vld [vmem:[%s1260_s1 + $0x38] sm:$0xff]  ;;  %v381_v34 = vld [vmem:[%s1260_s1 + $0x30] sm:$0xff]  ;;  %v379_v36 = vld [vmem:[%s1260_s1 + $0x20] sm:$0xff]  ;;  %v275_v50 = vadd.s32 4294967288, %v270_v48  ;;  %v282_v53 = vadd.s32 4294967280, %v270_v48  ;;  %s911_s22 = smov [#allocation5]  }
  0x3c   : > { %206 = vmax.xlane.f32.xlu1 %v205_v8  ;;  %733 = vmatpush3.msra.mxu0 %v382_v33  ;;  %v378_v37 = vld [vmem:[%s1260_s1 + $0x18] sm:$0xff]  ;;  %v377_v38 = vld [vmem:[%s1260_s1 + $0x10] sm:$0xff]  ;;  %v376_v39 = vld [vmem:[%s1260_s1 + $0x8] sm:$0xff]  ;;  %v289_v57 = vadd.s32 4294967272, %v270_v48  ;;  %v296_v59 = vadd.s32 4294967264, %v270_v48  ;;  %v303_v60 = vadd.s32 4294967256, %v270_v48  ;;  %v273_v61 = vsub.s32 %v270_v48, %v1147_v52  ;;  %p842_p13 = pnand %p841_p11, %p1271_p12 }
  0x3d   : > { %233 = vadd.xlane.f32.xlu0 %v232_v9  ;;  %734 = vmatprep.subr.mxu0 %v909_v32  ;;  %v375_v40 = vld [vmem:[%s1260_s1] sm:$0xff]  ;;  %v278_v55 = vsub.s32 %v275_v50, %v1147_v52  ;;  %v310_v63 = vadd.s32 4294967248, %v270_v48  ;;  %v285_v3 = vsub.s32 %v282_v53, %v1147_v52  ;;  %v317_v8 = vadd.s32 4294967240, %v270_v48  ;;  %s844_s26 = sshll.u32 %s911_s22, 4  ;;  %s845_s26 = int_to_ptr.vmem [resolvable:$false] %s844_s26 }
  0x3e   : > { %735 = vmatpush3.msra.mxu0 %v381_v34  ;;  %vm315_vm6 = vcmask 458112   ;;  %vm322_vm7 = vcmask 523712   ;;  %vm373_vm8 = vcmask 1040384   ;;  %vm383_vm9 = vcmask 523264   ;;  %p843_p4 = pneg %p842_p13  ;;  %s846_s27 = scalar_lea.vmem %s845_s26, 4096 }
  0x3f   : > { %736 = vmatprep.subr.mxu0 %v909_v32  ;;  %v320_v34 = vsub.s32 %v317_v8, %v1147_v52  ;;  %vm463_vm10 = vcmask 1043456   ;;  %vm459_vm11 = vcmask 31744   ;;  %p847_p5 = scmp.lt.s32.totalorder %s1212_s7, %s845_s26  ;;  %p848_p7 = scmp.lt.s32.totalorder %s846_s27, %s840_s20 }
  0x40   : > { %239 = vadd.xlane.f32.xlu1 %v238_v12  ;;  %737 = vmatpush3.msra.mxu0 %v380_v35  ;;  %v292_v12 = vsub.s32 %v289_v57, %v1147_v52 }
  0x41   : > { %209 = vmax.xlane.f32.xlu0 %v208_v13  ;;  %738 = vmatprep.subr.mxu0 %v909_v32  ;;  %p849_p8 = por %p848_p7, %p847_p5 }
  0x42   : > { %739 = vmatpush3.msra.mxu0 %v379_v36 }
  0x43   : > { %740 = vmatprep.subr.mxu0 %v909_v32  ;;  %p850_p10 = pnand %p849_p8, %p843_p4 }
  0x44   : > { %242 = vadd.xlane.f32.xlu1 %v241_v16  ;;  %741 = vmatpush3.msra.mxu0 %v378_v37 }
  0x45   : > { %212 = vmax.xlane.f32.xlu0 %v211_v17  ;;  %742 = vmatprep.subr.mxu0 %v909_v32 }
  0x46   : > { %743 = vmatpush3.msra.mxu0 %v377_v38 }
  0x47   : > { %744 = vmatprep.subr.mxu0 %v909_v32 }
  0x48   : > { %245 = vadd.xlane.f32.xlu1 %v244_v20  ;;  %745 = vmatpush3.msra.mxu0 %v376_v39  ;;  %v299_v20 = vsub.s32 %v296_v59, %v1147_v52 }
  0x49   : > { %215 = vmax.xlane.f32.xlu0 %v214_v21  ;;  %746 = vmatprep.subr.mxu0 %v909_v32 }
  0x4a   : > { %747 = vmatpush3.msra.mxu0 %v375_v40 }
  0x4c   : > { %248 = vadd.xlane.f32.xlu1 %v247_v24  ;;  %v306_v24 = vsub.s32 %v303_v60, %v1147_v52 }
  0x4d   : > { %218 = vmax.xlane.f32.xlu0 %v217_v25 }
  0x50   : > { %251 = vadd.xlane.f32.xlu1 %v250_v28 }
  0x51   : > { %221 = vmax.xlane.f32.xlu0 %v220_v29 }
  0x54   : > { %227 = vmax.xlane.f32.xlu1 %v226_v30  ;;  %v313_v30 = vsub.s32 %v310_v63, %v1147_v52 }
  0x55   : > { %224 = vmax.xlane.f32.xlu0 %v223_v31 }
  0xc1   : > { %v237_v41 = vpop.xlane.xlu1 %236 }
  0xc2   : > { %v231_v42 = vpop.xlane.xlu0 %230  ;;  %v255_v17 = vmul.f32 0.00390625, %v237_v41 }
  0xc3   : > { %v253_v62 = vmul.f32 0.00390625, %v231_v42 }
  0xc4   : > { %v345_v41 = vrot.slane %v255_v17, %v285_v3 }
  0xc5   : > { %v207_v43 = vpop.xlane.xlu1 %206  ;;  %v336_v25 = vrot.slane %v253_v62, %v273_v61 }
  0xc6   : > { %v234_v44 = vpop.xlane.xlu0 %233  ;;  %v274_v31 = vrot.slane %v207_v43, %v273_v61 }
  0xc7   : > { %v254_v56 = vmul.f32 0.00390625, %v234_v44 }
  0xc9   : > { %v240_v46 = vpop.xlane.xlu1 %239  ;;  %v340_v9 = vrot.slane %v254_v56, %v278_v55 }
  0xca   : > { %v210_v47 = vpop.xlane.xlu0 %209  ;;  %v256_v13 = vmul.f32 0.00390625, %v240_v46 }
  0xcb   : > { %v279_v28 = vrot.slane %v210_v47, %v278_v55  ;;  %v341_v36 = vsel %vm280_vm1, %v340_v9, %v336_v25  ;;  %v458_v9 = vld [vmem:[%s1261_s2] sm:$0xf] }
  0xcc   : > { %v350_v37 = vrot.slane %v256_v13, %v292_v12  ;;  %v346_v47 = vsel %vm287_vm2, %v345_v41, %v341_v36  ;;  %752 = vmatpush3.msk.msra.mxu1 %vm463_vm10, %v458_v9 }
  0xcd   : > { %v243_v49 = vpop.xlane.xlu1 %242  ;;  %v281_v45 = vsel %vm280_vm1, %v279_v28, %v274_v31 }
  0xce   : > { %v213_v51 = vpop.xlane.xlu0 %212  ;;  %v257_v21 = vmul.f32 0.00390625, %v243_v49 }
  0xcf   : > { %v286_v32 = vrot.slane %v213_v51, %v285_v3  ;;  %v351_v51 = vsel %vm294_vm3, %v350_v37, %v346_v47 }
  0xd0   : > { %v355_v42 = vrot.slane %v257_v21, %v299_v20 }
  0xd1   : > { %v246_v54 = vpop.xlane.xlu1 %245  ;;  %v288_v48 = vsel %vm287_vm2, %v286_v32, %v281_v45 }
  0xd2   : > { %v216_v58 = vpop.xlane.xlu0 %215  ;;  %v258_v29 = vmul.f32 0.00390625, %v246_v54  ;;  %v356_v57 = vsel %vm301_vm4, %v355_v42, %v351_v51 }
  0xd3   : > { %v293_v38 = vrot.slane %v216_v58, %v292_v12 }
  0xd4   : > { %v360_v46 = vrot.slane %v258_v29, %v306_v24 }
  0xd5   : > { %v249_v7 = vpop.xlane.xlu1 %248  ;;  %v295_v53 = vsel %vm294_vm3, %v293_v38, %v288_v48 }
  0xd6   : > { %v219_v16 = vpop.xlane.xlu0 %218  ;;  %v259_v33 = vmul.f32 0.00390625, %v249_v7  ;;  %v361_v60 = vsel %vm308_vm5, %v360_v46, %v356_v57 }
  0xd7   : > { %v300_v44 = vrot.slane %v219_v16, %v299_v20 }
  0xd8   : > { %v365_v49 = vrot.slane %v259_v33, %v313_v30 }
  0xd9   : > { %v252_v35 = vpop.xlane.xlu1 %251  ;;  %v302_v58 = vsel %vm301_vm4, %v300_v44, %v295_v53 }
  0xda   : > { %v222_v39 = vpop.xlane.xlu0 %221  ;;  %v260_v40 = vmul.f32 0.00390625, %v252_v35  ;;  %v366_v62 = vsel %vm315_vm6, %v365_v49, %v361_v60 }
  0xdb   : > { %v307_v43 = vrot.slane %v222_v39, %v306_v24 }
  0xdc   : > { %v370_v54 = vrot.slane %v260_v40, %v320_v34 }
  0xdd   : > { %v228_v50 = vpop.xlane.xlu1 %227  ;;  %v309_v61 = vsel %vm308_vm5, %v307_v43, %v302_v58 }
  0xde   : > { %v225_v55 = vpop.xlane.xlu0 %224  ;;  %v321_v56 = vrot.slane %v228_v50, %v320_v34  ;;  %v371_v7 = vsel %vm322_vm7, %v370_v54, %v366_v62 }
  0xdf   : > { %v314_v59 = vrot.slane %v225_v55, %v313_v30  ;;  %v549_v30 = vsub.s32 0, %v1147_v52 }
  0xe1   : > { %v316_v63 = vsel %vm315_vm6, %v314_v59, %v309_v61 }
  0xe2   : > { %v323_v3 = vsel %vm322_vm7, %v321_v56, %v316_v63 }
  0xe3   : > { %v374_v8 = vsel %vm373_vm8, %v323_v3, %v371_v7 }
  0xe4   : > { %749 = vmatmul.mubr.msk.f32.vlgmr.msra.gmra.mxu0 %vm383_vm9, %v374_v8 }
 0x1a4   : > { %v453_v12 = vpop.f32.mrf.mxu0 }
 0x1a5   : > { %v457_v13 = vmax.f32 %v453_v12, 0.0 }
 0x1a6   : > { %v750_v16 = vpop.f32.mrf.mxu0 }
 0x1a7   : > { %754 = vmatmul.mubr.msk.f32.vlgmr.msra.gmra.mxu1 %vm459_vm11, %v457_v13 }
 0x267   : > { %v533_v17 = vpop.f32.mrf.mxu1 }
 0x268   : > { %v538_v20 = vrot.slane %v533_v17, 1 }
 0x269   : > { %v755_v21 = vpop.f32.mrf.mxu1 }
 0x26a   : > { %v540_v24 = vadd.f32 %v538_v20, %v533_v17 }
 0x26c   : > { %v713_v25 = vmul.f32 -1.442695, %v540_v24 }
 0x26e   : > { %808 = vpow2.f32 %v713_v25 }
 0x27b   : > { %v809_v28 = vpop.eup %808 }
 0x27c   : > { %v544_v29 = vadd.f32 1.0, %v809_v28 }
 0x27e   : > { %810 = vrcp.f32 %v544_v29 }
 0x28b   : > { %v811_v31 = vpop.eup %810 }
 0x28c   : > { %v550_v32 = vrot.slane %v811_v31, %v549_v30 }
 0x28e   : > { %556 = vbcast.lane.b32.xlu1 %v550_v32, 264  ;;  %552 = vbcast.lane.b32.xlu0 %v550_v32, 256 }
 0x292   : > { %560 = vbcast.lane.b32.xlu1 %v550_v32, 272  ;;  %568 = vbcast.lane.b32.xlu0 %v550_v32, 288 }
 0x296   : > { %564 = vbcast.lane.b32.xlu1 %v550_v32, 280  ;;  %576 = vbcast.lane.b32.xlu0 %v550_v32, 304 }
 0x29a   : > { %572 = vbcast.lane.b32.xlu1 %v550_v32, 296 }
 0x29e   : > { %580 = vbcast.lane.b32.xlu1 %v550_v32, 312 }
 0x300   : > { %v557_v33 = vpop.permute.xlu1 %556  ;;  %v553_v34 = vpop.permute.xlu0 %552 }
 0x301   : > { %v584_v35 = vmul.f32 %v557_v33, %v1058_v5  ;;  %v585_v36 = vmul.f32 %v557_v33, %v1061_v6  ;;  %v582_v37 = vmul.f32 %v553_v34, %v1050_v2  ;;  %v583_v52 = vmul.f32 %v553_v34, %v1055_v4 }
 0x303   : > { %600 = vst [vmem:[%s1179_s6 + $0x10] sm:$0xff] %v584_v35  ;;  %601 = vst [vmem:[%s1179_s6 + $0x18] sm:$0xff] %v585_v36 }
 0x304   : > { %598 = vst [vmem:[%s1179_s6] sm:$0xff] %v582_v37  ;;  %599 = vst [vmem:[%s1179_s6 + $0x8] sm:$0xff] %v583_v52  ;;  %v561_v5 = vpop.permute.xlu1 %560  ;;  %v569_v2 = vpop.permute.xlu0 %568 }
 0x305   : > { %v586_v4 = vmul.f32 %v561_v5, %v1044_v0  ;;  %v587_v6 = vmul.f32 %v561_v5, %v1047_v1  ;;  %v590_v38 = vmul.f32 %v569_v2, %v1080_v14  ;;  %v591_v39 = vmul.f32 %v569_v2, %v1083_v15 }
 0x307   : > { %602 = vst [vmem:[%s1179_s6 + $0x20] sm:$0xff] %v586_v4  ;;  %603 = vst [vmem:[%s1179_s6 + $0x28] sm:$0xff] %v587_v6 }
 0x308   : > { %606 = vst [vmem:[%s1179_s6 + $0x40] sm:$0xff] %v590_v38  ;;  %607 = vst [vmem:[%s1179_s6 + $0x48] sm:$0xff] %v591_v39  ;;  %v565_v40 = vpop.permute.xlu1 %564  ;;  %v577_v41 = vpop.permute.xlu0 %576 }
 0x309   : > { %v588_v0 = vmul.f32 %v565_v40, %v1070_v10  ;;  %v589_v42 = vmul.f32 %v565_v40, %v1073_v11  ;;  %v594_v1 = vmul.f32 %v577_v41, %v1100_v22  ;;  %v595_v14 = vmul.f32 %v577_v41, %v1103_v23 }
 0x30b   : > { %604 = vst [vmem:[%s1179_s6 + $0x30] sm:$0xff] %v588_v0  ;;  %605 = vst [vmem:[%s1179_s6 + $0x38] sm:$0xff] %v589_v42 }
 0x30c   : > { %610 = vst [vmem:[%s1179_s6 + $0x60] sm:$0xff] %v594_v1  ;;  %611 = vst [vmem:[%s1179_s6 + $0x68] sm:$0xff] %v595_v14  ;;  %v573_v15 = vpop.permute.xlu1 %572 }
 0x30d   : > { %v592_v44 = vmul.f32 %v573_v15, %v1090_v18  ;;  %v593_v45 = vmul.f32 %v573_v15, %v1093_v19 }
 0x30f   : > { %608 = vst [vmem:[%s1179_s6 + $0x50] sm:$0xff] %v592_v44  ;;  %609 = vst [vmem:[%s1179_s6 + $0x58] sm:$0xff] %v593_v45 }
 0x310   : > { %v581_v10 = vpop.permute.xlu1 %580 }
 0x311   : > { %v596_v11 = vmul.f32 %v581_v10, %v1110_v26  ;;  %v597_v18 = vmul.f32 %v581_v10, %v1113_v27 }
 0x313   : > { %612 = vst [vmem:[%s1179_s6 + $0x70] sm:$0xff] %v596_v11  ;;  %613 = vst [vmem:[%s1179_s6 + $0x78] sm:$0xff] %v597_v18 }
 0x314   : > { %853 = shalt.err (!%p850_p10)
}
 0x315   : > { %s854_s28 = scalar_lea.hbm %s1210_s19, 2048  ;;  %s858_s10 = scalar_lea.hbm %s1262_s3, 4096 }
 0x316   : > { %p855_p0 = scmp.ne.s32.totalorder %s1210_s19, %s854_s28  ;;  %p859_p1 = scmp.lt.s32.totalorder %s1210_s19, %s1262_s3 }
 0x317   : > { %p860_p3 = scmp.lt.s32.totalorder %s858_s10, %s854_s28 }
 0x318   : > { %p856_p2 = pnand %p855_p0, %p1271_p12 }
 0x319   : > { %p861_p6 = por %p860_p3, %p859_p1 }
 0x31a   : > { %p857_p9 = pneg %p856_p2 }
 0x31c   : > { %p862_p11 = pnand %p861_p6, %p857_p9 }
 0x31e   : > { %865 = shalt.err (!%p862_p11)
}
 0x31f   : > { %s912_s4 = smov 256   ;;  %s913_s6 = smov 16  }
 0x320   : > { %758 = dma.vmem_to_hbm [thread:$0]  (%p1271_p12), %s1212_s7, 2048, %s1210_s19, %s615_s16, %s912_s4, %s912_s4, %s913_s6  }
 0x321 PF: > { %s643_s9 = sand.u32 1, %s892_s12   ;;  %p1272_p13 = scmp.ne.s32.totalorder %s1268_s25, 0 }
 0x322   : > { %p1273_p4 = scmp.ge.s32.totalorder %s904_s15, 2  ;;  %s644_s8 = scalar_lea.sflag [#allocation4], %s643_s9 }
 0x324   : > { %p765_p5 = pnand %p1273_p4, %p1272_p13 }
 0x326   : > { %p766_p7 = pneg %p765_p5 }
 0x328   : > { %887 = dma.done.wait (%p766_p7), %s644_s8, 2048  }
 0x329   : > { %889 = vsyncadd (%p766_p7), %s644_s8, 4294965248  ;;  %p16_p8 = scmp.ge.s32.totalorder %s959_s18, 4   ;;  %s1274_s12 = smov %s896_s13 }
 0x32a   : > { %s1275_s13 = smov %s900_s14  ;;  %s1276_s14 = smov %s971_s21 }
 0x32b   : > { %s1277_s15 = smov %s959_s18  ;;  %18 = sbr.rel (!%p16_p8) target bundleno = 5 (0x5), region = 77 }
 0x330   :  { %649 = vsyncpa [#allocation3], 1 }
 0x331   :  { %651 = vsyncpa [#allocation3 + $0x1], 1 }
 0x332   :  { %652 = vsyncpa [#allocation4], 1 }
 0x333   :  { %654 = vsyncpa [#allocation4 + $0x1], 1 }

</bundles_post_ra>
